<compile_context>
chip_gen: v6e
topology: v6e:2x2x1
jax: 0.10.0
libtpu: 0.0.40
codegen_flags: <defaults>
</compile_context>

<pallas_src>
import functools

import jax
import jax.numpy as jnp
from jax.experimental import pallas as pl
from jax.experimental.pallas import tpu as pltpu


def _round_up(a, b):
    return (a + b - 1) // b * b


def operator_kernel(x_ref,      # VMEM (1, c_in, tile_m)
                    w_f_ref,    # VMEM (base_nf, c_in)   fused (W_enc @ W_mid)^T
                    b_f_ref,    # VMEM (base_nf, 1)      fused bias (incl. val)
                    w_d_ref,    # VMEM (out_nc, base_nf) decoder weight^T
                    b_d_ref,    # VMEM (out_nc, 1)       decoder bias
                    y_ref,      # VMEM (1, out_nc, tile_m)
                    *, chunk, nchunks):
    # Tiny weights: load once per grid step.
    w_f = w_f_ref[...]
    b_f = b_f_ref[...]
    w_d = w_d_ref[...]
    b_d = b_d_ref[...]

    # Iterate over lane chunks of the DMA tile so the (base_nf, chunk) f32
    # intermediate stays a few hundred KiB regardless of tile_m.  chunk and
    # nchunks are Python ints -> fully static slices (zero indexing cost) and
    # the loop is unrolled at trace time.
    for c in range(nchunks):
        off = c * chunk
        x = x_ref[0, :, pl.ds(off, chunk)]                       # (c_in, chunk)

        # fused encoder + val + mid_conv (single small matmul, K = c_in)
        h = jnp.dot(w_f, x, preferred_element_type=jnp.float32) + b_f

        # LeakyReLU (PyTorch default negative_slope = 0.01)
        h = jnp.maximum(h, 0.01 * h)

        # decoder
        y = jnp.dot(w_d, h, preferred_element_type=jnp.float32) + b_d

        y_ref[0, :, pl.ds(off, chunk)] = y.astype(y_ref.dtype)


def operator_forward(x_nchw, val, params, *, tile_m=32768, lane_chunk=1024):
    """Forward pass of `Operator`.

    x_nchw: (N, C_in, H, W) float32.
    val:    scalar retouch strength (must be a true scalar / per-call constant,
            since it is folded into the fused bias on the host).
    """
    w_enc, b_enc, w_mid, b_mid, w_dec, b_dec = params
    n, c_in, h, w = x_nchw.shape
    base_nf = w_enc.shape[1]
    out_nc = w_dec.shape[1]

    val = jnp.asarray(val, dtype=jnp.float32)

    # --- host-side algebraic fusion of everything before the LeakyReLU ---
    # (x@W_enc + b_enc + val)@W_mid + b_mid
    #   = x @ (W_enc@W_mid) + (b_enc@W_mid + b_mid + val*sum_k W_mid[k,:])
    w_fused = w_enc @ w_mid                                    # (c_in, base_nf)
    b_fused = (b_enc @ w_mid + b_mid
               + val * jnp.sum(w_mid, axis=0, keepdims=True))  # (1, base_nf)

    # transpose for the (C, M) pixels-in-lanes layout
    w_f_t = jnp.asarray(w_fused.T, jnp.float32)                # (base_nf, c_in)
    b_f_t = jnp.asarray(b_fused.T, jnp.float32)                # (base_nf, 1)
    w_d_t = jnp.asarray(w_dec.T, jnp.float32)                  # (out_nc, base_nf)
    b_d_t = jnp.asarray(b_dec.T, jnp.float32)                  # (out_nc, 1)

    # NCHW -> (N, C, H*W): pure reshape, no transpose / extra HBM pass.
    hw = h * w
    x3 = x_nchw.reshape(n, c_in, hw).astype(jnp.float32)

    # --- tile selection (lane-dense: multiples of 128) ---
    hw_pad128 = _round_up(hw, 128)
    tm = min(tile_m, hw_pad128)
    # Keep >=2 spatial grid steps when there is only one image, so both
    # TensorCores get work on v7x (v5e/v6e: harmless).
    if n == 1 and hw_pad128 >= 256:
        tm = min(tm, _round_up(pl.cdiv(hw_pad128, 2), 128))
    tm = max(tm, 128)
    if tm > lane_chunk:
        tm = (tm // lane_chunk) * lane_chunk   # tile is a whole number of chunks
        chunk = lane_chunk
    else:
        chunk = tm
    nchunks = tm // chunk

    # No host-side padding: the ragged boundary block (when hw % tm != 0) is
    # handled by Pallas' clipped edge DMAs; garbage lanes are never written.
    grid = (n, pl.cdiv(hw, tm))

    # Explicit VMEM budget (portable to v7x 64 MiB / v5e scoped defaults).
    blk_bytes = 8 * tm * 4                       # 8-sublane-padded (c, tm) f32 block
    vmem_est = 2 * 2 * blk_bytes                 # double-buffered x and y blocks
    vmem_est += 6 * base_nf * chunk * 4          # per-chunk intermediates (+slack)
    vmem_est += 1 << 20                          # weights / misc
    vmem_limit = int(min(48 * 1024 * 1024, max(16 * 1024 * 1024, 2 * vmem_est)))

    full = lambda b, i: (0, 0)   # whole-array blocks for weights / biases

    y3 = pl.pallas_call(
        functools.partial(operator_kernel, chunk=chunk, nchunks=nchunks),
        out_shape=jax.ShapeDtypeStruct((n, out_nc, hw), jnp.float32),
        grid_spec=pltpu.PrefetchScalarGridSpec(
            num_scalar_prefetch=0,
            grid=grid,
            in_specs=[
                pl.BlockSpec((1, c_in, tm), lambda b, i: (b, 0, i)),   # x tile
                pl.BlockSpec((base_nf, c_in), full),                   # W fused^T
                pl.BlockSpec((base_nf, 1), full),                      # b fused^T
                pl.BlockSpec((out_nc, base_nf), full),                 # W_dec^T
                pl.BlockSpec((out_nc, 1), full),                       # b_dec^T
            ],
            out_specs=pl.BlockSpec((1, out_nc, tm), lambda b, i: (b, 0, i)),
        ),
        compiler_params=pltpu.CompilerParams(
            dimension_semantics=("parallel", "parallel"),
            vmem_limit_bytes=vmem_limit),
    )(x3, w_f_t, b_f_t, w_d_t, b_d_t)

    return y3.reshape(n, out_nc, h, w)


def init_params(key, in_nc=3, out_nc=3, base_nf=64):
    """Deterministic synthetic init matching nn.Conv2d(k=1) parameter shapes.

    PyTorch conv weight is (out_c, in_c, 1, 1); we store the channel matmul
    matrices already transposed to (in_c, out_c) for `x @ W`.
    """
    k = jax.random.split(key, 6)
    scale = 0.1
    w_enc = scale * jax.random.normal(k[0], (in_nc, base_nf), jnp.float32)
    b_enc = scale * jax.random.normal(k[1], (1, base_nf), jnp.float32)
    w_mid = scale * jax.random.normal(k[2], (base_nf, base_nf), jnp.float32)
    b_mid = scale * jax.random.normal(k[3], (1, base_nf), jnp.float32)
    w_dec = scale * jax.random.normal(k[4], (base_nf, out_nc), jnp.float32)
    b_dec = scale * jax.random.normal(k[5], (1, out_nc), jnp.float32)
    return w_enc, b_enc, w_mid, b_mid, w_dec, b_dec


def operator_ref(x_nchw, val, params):
    """Pure-JAX reference mirroring the PyTorch forward (for sanity check)."""
    w_enc, b_enc, w_mid, b_mid, w_dec, b_dec = params
    x = jnp.transpose(x_nchw, (0, 2, 3, 1))                 # NHWC
    x_code = x @ w_enc + b_enc
    y_code = x_code + val
    y_code = y_code @ w_mid + b_mid
    y_code = jnp.where(y_code >= 0, y_code, 0.01 * y_code)  # LeakyReLU(0.01)
    y = y_code @ w_dec + b_dec
    return jnp.transpose(y, (0, 3, 1, 2))                   # NCHW


if __name__ == "__main__":
    key = jax.random.PRNGKey(0)
    k_x, k_p, k_x2 = jax.random.split(key, 3)

    in_nc, out_nc, base_nf = 3, 3, 64
    params = init_params(k_p, in_nc=in_nc, out_nc=out_nc, base_nf=base_nf)

    # Primary small test (H*W divides evenly into 128-lane tiles).
    x = jax.random.uniform(k_x, (2, in_nc, 16, 16), jnp.float32)  # NCHW
    val = 0.5
    y = jax.block_until_ready(operator_forward(x, val, params))
    y_ref = operator_ref(x, val, params)
    assert y.shape == (2, out_nc, 16, 16)
    assert jnp.allclose(y, y_ref, atol=1e-4, rtol=1e-4)

    # Ragged spatial extent (H*W = 324, not a multiple of the lane tile):
    # exercises the no-pad / clipped-boundary-block path and the >=2-step
    # spatial grid when N == 1.
    x2 = jax.random.uniform(k_x2, (1, in_nc, 18, 18), jnp.float32)
    y2 = jax.block_until_ready(operator_forward(x2, 0.25, params))
    y2_ref = operator_ref(x2, 0.25, params)
    assert y2.shape == (1, out_nc, 18, 18)
    assert jnp.allclose(y2, y2_ref, atol=1e-4, rtol=1e-4)

    print("KERNEL_OK")
</pallas_src>

<mosaic_0001>
module attributes {stable_mosaic.version = 11 : i64} {
  func.func @operator_kernel(%arg0: i32, %arg1: i32, %arg2: memref<1x3x256xf32, #tpu.memory_space<vmem>>, %arg3: memref<64x3xf32, #tpu.memory_space<vmem>>, %arg4: memref<64x1xf32, #tpu.memory_space<vmem>>, %arg5: memref<3x64xf32, #tpu.memory_space<vmem>>, %arg6: memref<3x1xf32, #tpu.memory_space<vmem>>, %arg7: memref<1x3x256xf32, #tpu.memory_space<vmem>>) attributes {dimension_semantics = [#tpu.dimension_semantics<parallel>, #tpu.dimension_semantics<parallel>], iteration_bounds = array<i64: 2, 1>, scalar_prefetch = 0 : i64, scratch_operands = 0 : i64, tpu.core_type = #tpu.core_type<tc>, window_params = [{transform_indices = @transform_0, window_bounds = array<i64: 1, 3, 256>}, {pipeline_mode = #tpu.pipeline_mode<synchronous>, transform_indices = @transform_1, window_bounds = array<i64: 64, 3>}, {pipeline_mode = #tpu.pipeline_mode<synchronous>, transform_indices = @transform_2, window_bounds = array<i64: 64, 1>}, {pipeline_mode = #tpu.pipeline_mode<synchronous>, transform_indices = @transform_3, window_bounds = array<i64: 3, 64>}, {pipeline_mode = #tpu.pipeline_mode<synchronous>, transform_indices = @transform_4, window_bounds = array<i64: 3, 1>}, {transform_indices = @transform_5, window_bounds = array<i64: 1, 3, 256>}]} {
    %c0 = arith.constant 0 : index
    %c0_0 = arith.constant 0 : index
    %0 = vector.load %arg3[%c0, %c0_0] : memref<64x3xf32, #tpu.memory_space<vmem>>, vector<64x3xf32>
    %c0_1 = arith.constant 0 : index
    %c0_2 = arith.constant 0 : index
    %1 = vector.load %arg4[%c0_1, %c0_2] : memref<64x1xf32, #tpu.memory_space<vmem>>, vector<64x1xf32>
    %c0_3 = arith.constant 0 : index
    %c0_4 = arith.constant 0 : index
    %2 = vector.load %arg5[%c0_3, %c0_4] : memref<3x64xf32, #tpu.memory_space<vmem>>, vector<3x64xf32>
    %c0_5 = arith.constant 0 : index
    %c0_6 = arith.constant 0 : index
    %3 = vector.load %arg6[%c0_5, %c0_6] : memref<3x1xf32, #tpu.memory_space<vmem>>, vector<3x1xf32>
    %c0_7 = arith.constant 0 : index
    %c0_8 = arith.constant 0 : index
    %c0_9 = arith.constant 0 : index
    %4 = vector.load %arg2[%c0_7, %c0_8, %c0_9] : memref<1x3x256xf32, #tpu.memory_space<vmem>>, vector<1x3x256xf32>
    %5 = vector.shape_cast %4 : vector<1x3x256xf32> to vector<3x256xf32>
    %cst = arith.constant dense<0.000000e+00> : vector<64x256xf32>
    %6 = tpu.matmul %0, %5, %cst {dimension_numbers = #tpu.dot_dimension_numbers<[1], [0], [0], [1], [0, 0, 1, 1], [], []>} : vector<64x3xf32>, vector<3x256xf32>, vector<64x256xf32> -> vector<64x256xf32>
    %7 = vector.broadcast %1 : vector<64x1xf32> to vector<64x256xf32>
    %8 = arith.addf %6, %7 : vector<64x256xf32>
    %cst_10 = arith.constant 0.00999999977 : f32
    %9 = vector.broadcast %cst_10 : f32 to vector<64x256xf32>
    %10 = arith.mulf %9, %8 : vector<64x256xf32>
    %11 = arith.maximumf %8, %10 : vector<64x256xf32>
    %cst_11 = arith.constant dense<0.000000e+00> : vector<3x256xf32>
    %12 = tpu.matmul %2, %11, %cst_11 {dimension_numbers = #tpu.dot_dimension_numbers<[1], [0], [0], [1], [0, 0, 1, 1], [], []>} : vector<3x64xf32>, vector<64x256xf32>, vector<3x256xf32> -> vector<3x256xf32>
    %13 = vector.broadcast %3 : vector<3x1xf32> to vector<3x256xf32>
    %14 = arith.addf %12, %13 : vector<3x256xf32>
    %c0_12 = arith.constant 0 : index
    %c0_13 = arith.constant 0 : index
    %c0_14 = arith.constant 0 : index
    %15 = vector.load %arg7[%c0_12, %c0_13, %c0_14] : memref<1x3x256xf32, #tpu.memory_space<vmem>>, vector<1x3x256xf32>
    %16 = vector.shape_cast %15 : vector<1x3x256xf32> to vector<3x256xf32>
    %17 = vector.shape_cast %14 : vector<3x256xf32> to vector<1x3x256xf32>
    tpu.vector_store %arg7[%c0_12, %c0_13, %c0_14], %17 {strides = array<i32>} : memref<1x3x256xf32, #tpu.memory_space<vmem>>, vector<1x3x256xf32>,
    return
  }
  func.func @transform_0(%arg0: i32, %arg1: i32) -> (i32, i32, i32) {
    %c0_i32 = arith.constant 0 : i32
    %c0_i32_0 = arith.constant 0 : i32
    return %arg0, %c0_i32, %arg1 : i32, i32, i32
  }
  func.func @transform_1(%arg0: i32, %arg1: i32) -> (i32, i32) {
    %c0_i32 = arith.constant 0 : i32
    %c0_i32_0 = arith.constant 0 : i32
    %c0_i32_1 = arith.constant 0 : i32
    return %c0_i32, %c0_i32_0 : i32, i32
  }
  func.func @transform_2(%arg0: i32, %arg1: i32) -> (i32, i32) {
    %c0_i32 = arith.constant 0 : i32
    %c0_i32_0 = arith.constant 0 : i32
    %c0_i32_1 = arith.constant 0 : i32
    return %c0_i32, %c0_i32_0 : i32, i32
  }
  func.func @transform_3(%arg0: i32, %arg1: i32) -> (i32, i32) {
    %c0_i32 = arith.constant 0 : i32
    %c0_i32_0 = arith.constant 0 : i32
    %c0_i32_1 = arith.constant 0 : i32
    return %c0_i32, %c0_i32_0 : i32, i32
  }
  func.func @transform_4(%arg0: i32, %arg1: i32) -> (i32, i32) {
    %c0_i32 = arith.constant 0 : i32
    %c0_i32_0 = arith.constant 0 : i32
    %c0_i32_1 = arith.constant 0 : i32
    return %c0_i32, %c0_i32_0 : i32, i32
  }
  func.func @transform_5(%arg0: i32, %arg1: i32) -> (i32, i32, i32) {
    %c0_i32 = arith.constant 0 : i32
    %c0_i32_0 = arith.constant 0 : i32
    return %arg0, %c0_i32, %arg1 : i32, i32, i32
  }
}

</mosaic_0001>

<bundles_post_ra>
// kernel: tpu_custom_call.1
= control target key start
LH: loop header
LB: loop body
LE: loop exit
PB: predicated region body
PF: predicated region fallthrough
CT: control target
= control target key end

     0   :  { %s781_s18 = smov 0   ;;  %s783_s19 = smov 0   ;;  %s883_s0 = inlined_call_operand.vmem [shape: f32[2,3,256], index: 0, kind: input, shape index: {}]   ;;  %s884_s1 = inlined_call_operand.vmem [shape: f32[64,3], index: 1, kind: input, shape index: {}]   ;;  %s885_s2 = inlined_call_operand.vmem [shape: f32[64,1], index: 2, kind: input, shape index: {}]   ;;  %s886_s3 = inlined_call_operand.vmem [shape: f32[3,64], index: 3, kind: input, shape index: {}]   ;;  %s887_s4 = inlined_call_operand.vmem [shape: f32[3,1], index: 4, kind: input, shape index: {}]   ;;  %s888_s5 = inlined_call_operand.vmem [shape: f32[2,3,256], index: 5, kind: output, shape index: {}]  }
   0x1   :  { %s785_s20 = smov 0  }
   0x2 LB: > { %s27_s21 = sadd.s32 1, %s743_s19  ;;  %p676_p0 = scmp.ge.s32.totalorder %s747_s20, 1  ;;  %s747_s20 = sphi %s785_s20, %s15_s20   ;;  %s743_s19 = sphi %s783_s19, %s890_s19   ;;  %s739_s18 = sphi %s781_s18, %s889_s18  }
   0x3   : > { %p29_p1 = scmp.ge.s32.totalorder %s27_s21, 2  ;;  %p208_p2 = scmp.lt.s32.totalorder %s747_s20, 3 }
   0x5   : > { %s892_s21 = smov (%p29_p1, %s27_s21), 0  ;;  %p209_p3 = pnand %p676_p0, %p208_p2 }
   0x6   : > { %p245_p4 = scmp.lt.s32.totalorder (!%p209_p3), %s739_s18, 1 }
   0x7   : > { %212 = sbr.rel (%p209_p3) target bundleno = 466 (0x1d2), region = 40 }
   0xc   : > { %v749_v0 = vmov 0.0   ;;  %s894_s18 = smov (!%p245_p4, %s739_s18), 1  ;;  %v750_v1 = vmov 0   ;;  %v277_v2 = vld [vmem:[%s885_s2 + $0x28] sm:$0xff]  ;;  %v279_v3 = vld [vmem:[%s885_s2 + $0x38] sm:$0xff]  ;;  %v276_v4 = vld [vmem:[%s885_s2 + $0x20] sm:$0xff] }
   0xd   : > { %419 = vmatprep.mubr.f32.mxu0 %v749_v0  ;;  %573 = vmatprep.mubr.f32.mxu1 %v749_v0  ;;  %s694_s26 = sshll.u32 %s894_s18, 3  ;;  %v278_v5 = vld [vmem:[%s885_s2 + $0x30] sm:$0xff]  ;;  %vm350_vm0 = vcmask 1042432   ;;  %v264_v8 = vld [vmem:[%s884_s1] sm:$0xff]  ;;  %vm325_vm1 = vcmask 23552   ;;  %v275_v10 = vld [vmem:[%s885_s2 + $0x18] sm:$0xff] }
   0xe   : > { %723 = vset.pattern.permute.xlu1 %v750_v1  ;;  %722 = vset.pattern.permute.xlu0 %v750_v1  ;;  %s252_s29 = scalar_lea.vmem %s883_s0, %s694_s26  ;;  %v274_v9 = vld [vmem:[%s885_s2 + $0x10] sm:$0xff]  ;;  %v265_v11 = vld [vmem:[%s884_s1 + $0x8] sm:$0xff]  ;;  %v272_v12 = vld [vmem:[%s885_s2] sm:$0xff]  ;;  %vm505_vm2 = vcmask 523264   ;;  %s262_s23 = scalar_lea.vmem %s888_s5, %s694_s26 }
   0xf   : > { %310 = vperm.xlu1 %723, %v277_v2   ;;  %320 = vperm.xlu0 %722, %v279_v3   ;;  %v282_v6 = vld [vmem:[%s252_s29] sm:$0x77]  ;;  %v273_v13 = vld [vmem:[%s885_s2 + $0x8] sm:$0xff]  ;;  %v266_v14 = vld [vmem:[%s884_s1 + $0x10] sm:$0xff] }
  0x10   : > { %v324_v7 = vcombine.high %v282_v6, %v282_v6  ;;  %v281_v15 = vld [vmem:[%s887_s4] sm:$0x7]  ;;  %v267_v16 = vld [vmem:[%s884_s1 + $0x18] sm:$0xff]  ;;  %v269_v18 = vld [vmem:[%s884_s1 + $0x28] sm:$0xff] }
  0x11   : > { %v268_v17 = vld [vmem:[%s884_s1 + $0x20] sm:$0xff]  ;;  %v270_v19 = vld [vmem:[%s884_s1 + $0x30] sm:$0xff]  ;;  %v271_v20 = vld [vmem:[%s884_s1 + $0x38] sm:$0xff] }
  0x12   : > { %681 = vmatprep.subr.msk.mxu0 %vm350_vm0, %v324_v7 }
  0x13   : > { %305 = vperm.xlu1 %723, %v276_v4   ;;  %315 = vperm.xlu0 %722, %v278_v5  }
  0x14   : > { %682 = vmatpush1.msk.msra.mxu0 %vm350_vm0, %v282_v6 }
  0x15   : > { %683 = vmatmul.mubr.msk.f32.vlgmr.msra.gmra.mxu0 %vm325_vm1, %v264_v8 }
  0x16   : > { %425 = vmatprep.mubr.f32.mxu0 %v749_v0 }
  0x17   : > { %295 = vperm.xlu1 %723, %v274_v9   ;;  %300 = vperm.xlu0 %722, %v275_v10  }
  0x19   : > { %684 = vmatmul.mubr.msk.f32.gmra.mxu0 %vm325_vm1, %v265_v11 }
  0x1a   : > { %431 = vmatprep.mubr.f32.mxu0 %v749_v0 }
  0x1b   : > { %285 = vperm.xlu1 %723, %v272_v12   ;;  %290 = vperm.xlu0 %722, %v273_v13  }
  0x1d   : > { %685 = vmatmul.mubr.msk.f32.gmra.mxu0 %vm325_vm1, %v266_v14 }
  0x1e   : > { %437 = vmatprep.mubr.f32.mxu0 %v749_v0 }
  0x1f   : > { %502 = vperm.xlu0 %722, %v281_v15  }
  0x21   : > { %686 = vmatmul.mubr.msk.f32.gmra.mxu0 %vm325_vm1, %v267_v16 }
  0x22   : > { %443 = vmatprep.mubr.f32.mxu0 %v749_v0 }
  0x25   : > { %687 = vmatmul.mubr.msk.f32.gmra.mxu0 %vm325_vm1, %v268_v17 }
  0x26   : > { %449 = vmatprep.mubr.f32.mxu0 %v749_v0 }
  0x29   : > { %688 = vmatmul.mubr.msk.f32.gmra.mxu0 %vm325_vm1, %v269_v18 }
  0x2a   : > { %455 = vmatprep.mubr.f32.mxu0 %v749_v0 }
  0x2d   : > { %689 = vmatmul.mubr.msk.f32.gmra.mxu0 %vm325_vm1, %v270_v19 }
  0x2e   : > { %461 = vmatprep.mubr.f32.mxu0 %v749_v0 }
  0x31   : > { %690 = vmatmul.mubr.msk.f32.gmra.mxu0 %vm325_vm1, %v271_v20 }
  0x8a   : > { %v321_v31 = vpop.permute.xlu0 %320  ;;  %v311_v33 = vpop.permute.xlu1 %310 }
  0x8e   : > { %v316_v36 = vpop.permute.xlu0 %315  ;;  %v306_v38 = vpop.permute.xlu1 %305 }
  0x92   : > { %v301_v44 = vpop.permute.xlu0 %300  ;;  %v296_v49 = vpop.permute.xlu1 %295 }
  0x96   : > { %v291_v61 = vpop.permute.xlu0 %290  ;;  %v286_v4 = vpop.permute.xlu1 %285 }
  0xd5   : > { %v421_v21 = vpop.f32.mrf.mxu0 }
  0xd6   : > { %v422_v14 = vadd.f32 %v421_v21, %v286_v4 }
  0xd7   : > { %v423_v22 = vpop.f32.mrf.mxu0 }
  0xd8   : > { %v424_v11 = vadd.f32 %v423_v22, %v286_v4 }
  0xd9   : > { %v427_v23 = vpop.f32.mrf.mxu0 }
  0xda   : > { %v428_v8 = vadd.f32 %v427_v23, %v291_v61  ;;  %v468_v23 = vmul.f32 0.01, %v422_v14 }
  0xdb   : > { %v429_v24 = vpop.f32.mrf.mxu0 }
  0xdc   : > { %v430_v5 = vadd.f32 %v429_v24, %v291_v61  ;;  %v470_v19 = vmul.f32 0.01, %v428_v8  ;;  %v469_v24 = vmul.f32 0.01, %v424_v11 }
  0xdd   : > { %v433_v25 = vpop.f32.mrf.mxu0 }
  0xde   : > { %v434_v1 = vadd.f32 %v433_v25, %v296_v49  ;;  %v471_v17 = vmul.f32 0.01, %v430_v5  ;;  %v485_v21 = vmax.f32 %v424_v11, %v469_v24 }
  0xdf   : > { %v435_v26 = vpop.f32.mrf.mxu0 }
  0xe0   : > { %v436_v62 = vadd.f32 %v435_v26, %v296_v49  ;;  %v472_v15 = vmul.f32 0.01, %v434_v1  ;;  %v487_v22 = vmax.f32 %v430_v5, %v471_v17 }
  0xe1   : > { %v439_v27 = vpop.f32.mrf.mxu0 }
  0xe2   : > { %v440_v58 = vadd.f32 %v439_v27, %v301_v44  ;;  %v473_v12 = vmul.f32 0.01, %v436_v62  ;;  %v488_v26 = vmax.f32 %v434_v1, %v472_v15  ;;  %v486_v27 = vmax.f32 %v428_v8, %v470_v19 }
  0xe3   : > { %v441_v28 = vpop.f32.mrf.mxu0 }
  0xe4   : > { %v442_v55 = vadd.f32 %v441_v28, %v301_v44  ;;  %v474_v9 = vmul.f32 0.01, %v440_v58  ;;  %v489_v25 = vmax.f32 %v436_v62, %v473_v12  ;;  %v484_v28 = vmax.f32 %v422_v14, %v468_v23 }
  0xe5   : > { %v445_v29 = vpop.f32.mrf.mxu0 }
  0xe6   : > { %v446_v53 = vadd.f32 %v445_v29, %v306_v38  ;;  %v475_v6 = vmul.f32 0.01, %v442_v55  ;;  %v490_v20 = vmax.f32 %v440_v58, %v474_v9  ;;  %v280_v29 = vld [vmem:[%s886_s3] sm:$0x7] }
  0xe7   : > { %v447_v30 = vpop.f32.mrf.mxu0 }
  0xe8   : > { %v448_v50 = vadd.f32 %v447_v30, %v306_v38  ;;  %v476_v2 = vmul.f32 0.01, %v446_v53  ;;  %v491_v18 = vmax.f32 %v442_v55, %v475_v6 }
  0xe9   : > { %v451_v32 = vpop.f32.mrf.mxu0 }
  0xea   : > { %v452_v47 = vadd.f32 %v451_v32, %v311_v33  ;;  %v477_v63 = vmul.f32 0.01, %v448_v50  ;;  %v492_v16 = vmax.f32 %v446_v53, %v476_v2 }
  0xeb   : > { %v453_v34 = vpop.f32.mrf.mxu0 }
  0xec   : > { %v454_v45 = vadd.f32 %v453_v34, %v311_v33  ;;  %v478_v59 = vmul.f32 0.01, %v452_v47  ;;  %v493_v13 = vmax.f32 %v448_v50, %v477_v63 }
  0xed   : > { %v457_v35 = vpop.f32.mrf.mxu0 }
  0xee   : > { %v458_v42 = vadd.f32 %v457_v35, %v316_v36  ;;  %v479_v56 = vmul.f32 0.01, %v454_v45  ;;  %v494_v10 = vmax.f32 %v452_v47, %v478_v59 }
  0xef   : > { %v459_v37 = vpop.f32.mrf.mxu0 }
  0xf0   : > { %v460_v40 = vadd.f32 %v459_v37, %v316_v36  ;;  %v480_v54 = vmul.f32 0.01, %v458_v42  ;;  %v495_v7 = vmax.f32 %v454_v45, %v479_v56 }
  0xf1   : > { %v463_v39 = vpop.f32.mrf.mxu0 }
  0xf2   : > { %v464_v41 = vadd.f32 %v463_v39, %v321_v31  ;;  %v481_v51 = vmul.f32 0.01, %v460_v40  ;;  %v496_v3 = vmax.f32 %v458_v42, %v480_v54 }
  0xf3   : > { %v465_v43 = vpop.f32.mrf.mxu0 }
  0xf4   : > { %v466_v46 = vadd.f32 %v465_v43, %v321_v31  ;;  %v482_v48 = vmul.f32 0.01, %v464_v41  ;;  %v497_v0 = vmax.f32 %v460_v40, %v481_v51  ;;  %v503_v31 = vpop.permute.xlu0 %502 }
  0xf6   : > { %v483_v52 = vmul.f32 0.01, %v466_v46  ;;  %v498_v60 = vmax.f32 %v464_v41, %v482_v48 }
  0xf8   : > { %v499_v57 = vmax.f32 %v466_v46, %v483_v52 }
  0xfa   : > { %525 = vmatprep.subr.mxu1 %v499_v57 }
  0xfb   : > { %526 = vmatpush1.msra.mxu1 %v498_v60 }
  0xfc   : > { %527 = vmatprep.subr.mxu1 %v497_v0 }
  0xfd   : > { %528 = vmatpush1.msra.mxu1 %v496_v3 }
  0xfe   : > { %529 = vmatprep.subr.mxu1 %v495_v7 }
  0xff   : > { %530 = vmatpush1.msra.mxu1 %v494_v10 }
 0x100   : > { %531 = vmatprep.subr.mxu1 %v493_v13 }
 0x101   : > { %532 = vmatpush1.msra.mxu1 %v492_v16 }
 0x102   : > { %533 = vmatprep.subr.mxu1 %v491_v18 }
 0x103   : > { %534 = vmatpush1.msra.mxu1 %v490_v20 }
 0x104   : > { %535 = vmatprep.subr.mxu1 %v489_v25 }
 0x105   : > { %536 = vmatpush1.msra.mxu1 %v488_v26 }
 0x106   : > { %537 = vmatprep.subr.mxu1 %v487_v22 }
 0x107   : > { %538 = vmatpush1.msra.mxu1 %v486_v27 }
 0x108   : > { %539 = vmatprep.subr.mxu1 %v485_v21 }
 0x109   : > { %540 = vmatpush1.msra.mxu1 %v484_v28 }
 0x10a   : > { %691 = vmatmul.mubr.msk.f32.vlgmr.msra.gmra.mxu1 %vm505_vm2, %v280_v29 }
 0x1ca   : > { %v575_v30 = vpop.f32.mrf.mxu1 }
 0x1cb   : > { %v576_v33 = vadd.f32 %v575_v30, %v503_v31 }
 0x1cc   : > { %v577_v32 = vpop.f32.mrf.mxu1 }
 0x1cd   : > { %v578_v34 = vadd.f32 %v577_v32, %v503_v31 }
 0x1cf   : > { %v582_v35 = vcombine.low %v576_v33, %v578_v34 }
 0x1d1   : > { %584 = vst [vmem:[%s262_s23] sm:$0x77] %v582_v35 }
 0x1d2 PF: > { %s15_s20 = sadd.s32 1, %s747_s20   ;;  %s889_s18 = smov %s743_s19 }
 0x1d3   : > { %p12_p5 = scmp.ge.s32.totalorder %s15_s20, 4   ;;  %s890_s19 = smov %s892_s21 }
 0x1d5   :  { %14 = sbr.rel (!%p12_p5) target bundleno = 2 (0x2), region = 70 }

</bundles_post_ra>
